<compile_context>
chip_gen: v7x
topology: tpu7x:2x2x1
jax: 0.10.0
libtpu: 0.0.40
codegen_flags: <defaults>
</compile_context>

<pallas_src>
import math

import jax
import jax.numpy as jnp
from jax.experimental import pallas as pl
from jax.experimental.pallas import tpu as pltpu


def _rmsnorm_kernel(x_ref, g_ref, o_ref, *, eps):
    x = x_ref[...].astype(jnp.float32)                # (tm, dim) f32
    g = g_ref[...]                                    # (1, dim)  f32, pre-scaled by sqrt(dim)
    sq_sum = jnp.sum(x * x, axis=-1, keepdims=True)   # (tm, 1)   XLU reduction
    norm = jnp.sqrt(sq_sum) + eps                     # L2 norm + eps (matches torch exactly)
    inv = 1.0 / norm                                  # exact divide on a (tm,1) column: negligible
    o_ref[...] = ((x * inv) * g).astype(o_ref.dtype)  # two full-tile VPU multiplies


def _pick_block_rows(rows, dim, dtype, vmem_budget_bytes=48 * 1024 * 1024):
    """Dtype-aware row tile: ~4 MiB of *stored* data per buffer, VMEM-budgeted,
    and never a 1-step grid for non-tiny tensors (so the pipeline overlaps)."""
    itemsize = jnp.dtype(dtype).itemsize
    sublane = max(8, 32 // max(1, itemsize))          # 8 f32, 16 bf16, 32 int8
    total_bytes = rows * dim * itemsize

    # Estimated VMEM cost per row: 2x input + 2x output double buffers in the
    # stored dtype, plus ~3 f32 full-tile temporaries inside the kernel body.
    per_row_vmem = dim * (4 * itemsize + 3 * 4)
    budget_rows = max(sublane, vmem_budget_bytes // max(1, per_row_vmem))
    # TODO(synk): for very large dim where even an 8-row block overshoots the VMEM
    # budget, fall back to a two-pass kernel that tiles dim (sum-of-squares, then scale).

    target_bytes = 4 * 1024 * 1024                    # HBM-side bytes per buffer (stored dtype)
    br = max(sublane, target_bytes // max(1, dim * itemsize))
    br = min(br, budget_rows)
    br = max(sublane, (br // sublane) * sublane)

    if br >= rows:
        # Tiny tensors: a single block is fine.  Mid-size tensors: keep >= ~4
        # grid steps so DMA and compute actually pipeline (grid=(1,) serializes
        # prologue/compute/epilogue and costs 30-50% wall-clock).
        if total_bytes <= 2 * 1024 * 1024:
            return rows
        quarter = max(sublane, ((rows // 4) // sublane) * sublane)
        return min(rows, quarter)
    return br


def _dimension_semantics(num_steps):
    """Use real 2-TC sharding on v7x; plain 'parallel' elsewhere."""
    try:
        kind = jax.devices()[0].device_kind.lower()
    except Exception:
        kind = ""
    if num_steps >= 2 and "v7" in kind:
        return (pltpu.CORE_PARALLEL,)
    return ("parallel",)


def rmsnorm_pallas(x, g, eps=1e-6, block_rows=None):
    """x: (..., dim) array, g: (dim,) gain. Returns same shape/dtype as x."""
    orig_shape = x.shape
    dim = orig_shape[-1]
    rows = 1
    for s in orig_shape[:-1]:
        rows *= s
    x2 = x.reshape(rows, dim)

    # Fold sqrt(dim) into g once, in f32 (pure-Python constant, no extra
    # full-tile multiply inside the kernel).
    scale = math.sqrt(float(dim))
    g2 = (g.astype(jnp.float32) * jnp.float32(scale)).reshape(1, dim)

    if block_rows is None:
        block_rows = _pick_block_rows(rows, dim, x.dtype)
    block_rows = min(block_rows, rows)

    num_steps = pl.cdiv(rows, block_rows)
    grid = (num_steps,)

    itemsize = jnp.dtype(x.dtype).itemsize
    cost = pl.CostEstimate(
        flops=4 * rows * dim,                  # square, reduce-add, two scaling muls
        transcendentals=2 * rows,              # sqrt + divide per row
        bytes_accessed=2 * rows * dim * itemsize + 4 * dim,
    )

    kernel = lambda x_ref, g_ref, o_ref: _rmsnorm_kernel(x_ref, g_ref, o_ref, eps=eps)

    out = pl.pallas_call(
        kernel,
        out_shape=jax.ShapeDtypeStruct((rows, dim), x.dtype),
        grid_spec=pltpu.PrefetchScalarGridSpec(
            num_scalar_prefetch=0,
            grid=grid,
            in_specs=[
                pl.BlockSpec((block_rows, dim), lambda i: (i, 0)),
                pl.BlockSpec((1, dim), lambda i: (0, 0)),     # g resident across grid
            ],
            out_specs=pl.BlockSpec((block_rows, dim), lambda i: (i, 0)),
        ),
        compiler_params=pltpu.CompilerParams(
            dimension_semantics=_dimension_semantics(num_steps),
            # Explicit scoped-VMEM ceiling: covers 4 MiB double-buffers + f32
            # temporaries on v5e (16 MiB default) while staying inside v7x's
            # 64 MiB physical VMEM.
            vmem_limit_bytes=48 * 1024 * 1024,
        ),
        cost_estimate=cost,
    )(x2, g2)

    return out.reshape(orig_shape)


def rmsnorm_reference(x, g, eps=1e-6):
    dim = x.shape[-1]
    scale = jnp.sqrt(jnp.float32(dim))
    norm = jnp.linalg.norm(x.astype(jnp.float32), axis=-1, keepdims=True) + eps
    return (x.astype(jnp.float32) / norm * scale * g.astype(jnp.float32)).astype(x.dtype)


if __name__ == "__main__":
    key = jax.random.PRNGKey(0)
    batch, seq, hidden = 2, 8, 32

    x = jax.random.normal(key, (batch, seq, hidden), dtype=jnp.float32)
    # Deterministic parameter init: the module initializes g = ones(dim).
    g = jnp.ones((hidden,), dtype=jnp.float32)

    out = rmsnorm_pallas(x, g)
    out = jax.block_until_ready(out)

    ref = rmsnorm_reference(x, g)
    assert out.shape == x.shape and out.dtype == x.dtype
    assert jnp.allclose(out, ref, atol=1e-5, rtol=1e-5), "mismatch vs reference"

    print("KERNEL_OK")
</pallas_src>

<mosaic_0001>
module attributes {stable_mosaic.version = 11 : i64} {
  func.func @_lambda_(%arg0: i32, %arg1: memref<16x32xf32, #tpu.memory_space<vmem>>, %arg2: memref<1x32xf32, #tpu.memory_space<vmem>>, %arg3: memref<16x32xf32, #tpu.memory_space<vmem>>) attributes {dimension_semantics = [#tpu.dimension_semantics<parallel>], iteration_bounds = array<i64: 1>, scalar_prefetch = 0 : i64, scratch_operands = 0 : i64, tpu.core_type = #tpu.core_type<tc>, window_params = [{transform_indices = @transform_0, window_bounds = array<i64: 16, 32>}, {pipeline_mode = #tpu.pipeline_mode<synchronous>, transform_indices = @transform_1, window_bounds = array<i64: 1, 32>}, {transform_indices = @transform_2, window_bounds = array<i64: 16, 32>}]} {
    %c0 = arith.constant 0 : index
    %c0_0 = arith.constant 0 : index
    %0 = vector.load %arg1[%c0, %c0_0] : memref<16x32xf32, #tpu.memory_space<vmem>>, vector<16x32xf32>
    %c0_1 = arith.constant 0 : index
    %c0_2 = arith.constant 0 : index
    %1 = vector.load %arg2[%c0_1, %c0_2] : memref<1x32xf32, #tpu.memory_space<vmem>>, vector<1x32xf32>
    %2 = arith.mulf %0, %0 : vector<16x32xf32>
    %cst = arith.constant dense<0.000000e+00> : vector<16xf32>
    %3 = vector.multi_reduction <add>, %2, %cst [1] : vector<16x32xf32> to vector<16xf32>
    %4 = vector.shape_cast %3 : vector<16xf32> to vector<16x1xf32>
    %5 = math.sqrt %4 : vector<16x1xf32>
    %cst_3 = arith.constant 9.99999997E-7 : f32
    %6 = vector.broadcast %cst_3 : f32 to vector<16x1xf32>
    %7 = arith.addf %5, %6 : vector<16x1xf32>
    %cst_4 = arith.constant 1.000000e+00 : f32
    %8 = vector.broadcast %cst_4 : f32 to vector<16x1xf32>
    %9 = arith.divf %8, %7 : vector<16x1xf32>
    %10 = vector.broadcast %9 : vector<16x1xf32> to vector<16x32xf32>
    %11 = arith.mulf %0, %10 : vector<16x32xf32>
    %12 = vector.broadcast %1 : vector<1x32xf32> to vector<16x32xf32>
    %13 = arith.mulf %11, %12 : vector<16x32xf32>
    %c0_5 = arith.constant 0 : index
    %c0_6 = arith.constant 0 : index
    %14 = vector.load %arg3[%c0_5, %c0_6] : memref<16x32xf32, #tpu.memory_space<vmem>>, vector<16x32xf32>
    tpu.vector_store %arg3[%c0_5, %c0_6], %13 {strides = array<i32>} : memref<16x32xf32, #tpu.memory_space<vmem>>, vector<16x32xf32>,
    return
  }
  func.func @transform_0(%arg0: i32) -> (i32, i32) {
    %c0_i32 = arith.constant 0 : i32
    %c0_i32_0 = arith.constant 0 : i32
    return %arg0, %c0_i32 : i32, i32
  }
  func.func @transform_1(%arg0: i32) -> (i32, i32) {
    %c0_i32 = arith.constant 0 : i32
    %c0_i32_0 = arith.constant 0 : i32
    %c0_i32_1 = arith.constant 0 : i32
    return %c0_i32, %c0_i32_0 : i32, i32
  }
  func.func @transform_2(%arg0: i32) -> (i32, i32) {
    %c0_i32 = arith.constant 0 : i32
    %c0_i32_0 = arith.constant 0 : i32
    return %arg0, %c0_i32 : i32, i32
  }
}

</mosaic_0001>

<bundles_post_ra>
// kernel: tpu_custom_call.1
= control target key start
LH: loop header
LB: loop body
LE: loop exit
PB: predicated region body
PF: predicated region fallthrough
CT: control target
= control target key end

     0   :  { %7 = vsyncpa [#allocation3], 0  ;;  %s204_s0 = inlined_call_operand.hbm [shape: f32[16,32], index: 0, kind: input, shape index: {}]   ;;  %s205_s1 = inlined_call_operand.vmem [shape: f32[1,32], index: 1, kind: input, shape index: {}]   ;;  %s206_s2 = inlined_call_operand.hbm [shape: f32[16,32], index: 2, kind: output, shape index: {}]  }
   0x1   :  { %8 = vsyncpa [#allocation4], 0  ;;  %s148_s9 = smov [#allocation2]   ;;  %s100_s13 = scalar_lea.hbm %s204_s0, 256 }
   0x2   :  { %s14_s10 = sshll.u32 %s148_s9, 4  ;;  %p101_p0 = scmp.ne.s32.totalorder %s204_s0, %s100_s13  ;;  %s15_s10 = int_to_ptr.vmem [resolvable:$true] %s14_s10 }
   0x3   :  { %p104_p1 = scmp.lt.u32.totalorder %s100_s13, %s204_s0 }
   0x5   :  { %p106_p2 = pnand %p104_p1, %p101_p0 }
   0x7   :  { %109 = shalt.err (!%p106_p2)
}
   0x8   :  { %s110_s18 = scalar_lea.vmem %s15_s10, 256  ;;  %p115_p4 = scmp.lt.s32.totalorder %s15_s10, %s15_s10 }
   0x9   :  { %p111_p3 = scmp.ne.s32.totalorder %s15_s10, %s110_s18  ;;  %p116_p5 = scmp.lt.s32.totalorder %s110_s18, %s110_s18 }
   0xb   :  { %p117_p6 = por %p116_p5, %p115_p4 }
   0xd   :  { %p118_p7 = pnand %p117_p6, %p111_p3 }
   0xf   :  { %121 = shalt.err (!%p118_p7)
}
  0x10   :  { %s149_s19 = smov 128   ;;  %s150_s20 = smov 8  }
  0x11   :  { %20 = dma.hbm_to_vmem [thread:$0]  %s204_s0, 256, %s15_s10, [#allocation3], %s149_s19, %s149_s19, %s150_s20  }
  0x12   :  { %144 = dma.done.wait [#allocation3], 256  }
  0x13   :  { %145 = vsyncadd [#allocation3], 4294967040  ;;  %v26_v0 = vld [vmem:[#allocation2] sm:$0xff]  ;;  %vm31_vm0 = vcmask 261120   ;;  %v27_v1 = vld [vmem:[#allocation2 + $0x8] sm:$0xff]  ;;  %s151_s24 = smov [#allocation5]  }
  0x14   :  { %v29_v2 = vmul.f32 %v26_v0, %v26_v0  ;;  %v30_v3 = vmul.f32 %v27_v1, %v27_v1  ;;  %v87_v21 = vld [vmem:[%s205_s1] ss:$0 sm:$0xff]  ;;  %s75_s25 = sshll.u32 %s151_s24, 4  ;;  %s76_s25 = int_to_ptr.vmem [resolvable:$true] %s75_s25 }
  0x15   :  { %s122_s26 = scalar_lea.vmem %s76_s25, 256  ;;  %p127_p9 = scmp.lt.s32.totalorder %s76_s25, %s76_s25 }
  0x16   :  { %v32_v4 = vsel %vm31_vm0, %v29_v2, 0.0  ;;  %v35_v5 = vsel %vm31_vm0, %v30_v3, 0.0  ;;  %p123_p8 = scmp.ne.s32.totalorder %s76_s25, %s122_s26  ;;  %p128_p10 = scmp.lt.s32.totalorder %s122_s26, %s122_s26 }
  0x17   :  { %33 = vadd.xlane.f32.xlu0 %v32_v4 }
  0x18   :  { %p129_p11 = por %p128_p10, %p127_p9 }
  0x1a   :  { %p130_p12 = pnand %p129_p11, %p123_p8 }
  0x1b   :  { %36 = vadd.xlane.f32.xlu0 %v35_v5 }
  0xa4   :  { %v34_v6 = vpop.xlane.xlu0 %33 }
  0xa5   :  { %92 = vrsqrt.f32 %v34_v6  ;;  %vm40_vm1 = vcmp.eq.f32.partialorder %v34_v6, inf  ;;  %v43_v10 = vand.u32 2147483648, %v34_v6  ;;  %vm42_vm2 = vcmp.eq.f32.partialorder %v34_v6, 0.0 }
  0xa8   :  { %v37_v7 = vpop.xlane.xlu0 %36 }
  0xa9   :  { %94 = vrsqrt.f32 %v37_v7  ;;  %vm47_vm3 = vcmp.eq.f32.partialorder %v37_v7, inf  ;;  %v50_v16 = vand.u32 2147483648, %v37_v7  ;;  %vm49_vm4 = vcmp.eq.f32.partialorder %v37_v7, 0.0 }
  0xaf   :  { %v93_v8 = vpop.eup %92 }
  0xb0   :  { %v39_v9 = vmul.f32 %v93_v8, %v34_v6 }
  0xb2   :  { %v41_v11 = vsel %vm40_vm1, %v34_v6, %v39_v9 }
  0xb3   :  { %v95_v12 = vpop.eup %94  ;;  %v44_v13 = vsel %vm42_vm2, %v43_v10, %v41_v11 }
  0xb4   :  { %v52_v14 = vadd.f32 1e-06, %v44_v13  ;;  %v46_v15 = vmul.f32 %v95_v12, %v37_v7 }
  0xb6   :  { %96 = vrcp.f32 %v52_v14  ;;  %v48_v17 = vsel %vm47_vm3, %v37_v7, %v46_v15 }
  0xb7   :  { %v51_v18 = vsel %vm49_vm4, %v50_v16, %v48_v17 }
  0xb8   :  { %v53_v19 = vadd.f32 1e-06, %v51_v18 }
  0xba   :  { %98 = vrcp.f32 %v53_v19 }
  0xc0   :  { %v97_v20 = vpop.eup %96 }
  0xc1   :  { %v58_v22 = vmul.f32 %v97_v20, %v26_v0 }
  0xc3   :  { %v66_v23 = vmul.f32 %v87_v21, %v58_v22 }
  0xc4   :  { %v99_v24 = vpop.eup %98 }
  0xc5   :  { %v59_v25 = vmul.f32 %v99_v24, %v27_v1  ;;  %68 = vst.msk [vmem:[#allocation5] sm:$0xff] %vm31_vm0, %v66_v23 }
  0xc7   :  { %v67_v26 = vmul.f32 %v87_v21, %v59_v25 }
  0xc9   :  { %69 = vst.msk [vmem:[#allocation5 + $0x8] sm:$0xff] %vm31_vm0, %v67_v26 }
  0xca   :  { %133 = shalt.err (!%p130_p12)
}
  0xcb   :  { %s134_s28 = scalar_lea.hbm %s206_s2, 256 }
  0xcc   :  { %p135_p13 = scmp.ne.s32.totalorder %s206_s2, %s134_s28  ;;  %p138_p0 = scmp.lt.u32.totalorder %s134_s28, %s206_s2 }
  0xce   :  { %p140_p1 = pnand %p138_p0, %p135_p13 }
  0xd0   :  { %143 = shalt.err (!%p140_p1)
}
  0xd1   :  { %81 = dma.vmem_to_hbm [thread:$0]  %s76_s25, 256, %s206_s2, [#allocation4], %s149_s19, %s149_s19, %s150_s20  }
  0xd2   :  { %146 = dma.done.wait [#allocation4], 256  }
  0xd3   :  { %147 = vsyncadd [#allocation4], 4294967040 }
  0xd4   :  { %85 = vsyncpa [#allocation3], 1 }
  0xd5   :  { %86 = vsyncpa [#allocation4], 1 }

</bundles_post_ra>
